<compile_context>
chip_gen: v5e
topology: v5e:2x2
jax: 0.10.0
libtpu: 0.0.40
codegen_flags: <defaults>
</compile_context>

<pallas_src>
import functools

import jax
import jax.numpy as jnp
import numpy as np
from jax.experimental import pallas as pl
from jax.experimental.pallas import tpu as pltpu


def _round_up(x, m):
    return ((x + m - 1) // m) * m


def _onehot_gather_kernel(idx_ref, tbl_ref, out_ref, *, num_valid):
    """One grid step: gather T table rows via a one-hot matmul on the MXU.

    idx_ref: (T, 1)  int32  indices for this tile (clamped in-kernel)
    tbl_ref: (Vp, D) float  full row-padded table, resident in VMEM
    out_ref: (T, D)  float  gathered rows
    """
    # Clamp on the VPU so no out-of-bounds row can ever be selected.
    idx = jnp.clip(idx_ref[...], 0, num_valid - 1)        # (T, 1) int32
    t = out_ref.shape[0]
    vp = tbl_ref.shape[0]
    cols = jax.lax.broadcasted_iota(jnp.int32, (t, vp), 1)
    onehot = (cols == idx).astype(tbl_ref.dtype)          # (T, Vp), exact 0/1
    out_ref[...] = jnp.dot(
        onehot, tbl_ref[...], preferred_element_type=jnp.float32
    ).astype(out_ref.dtype)


@functools.partial(jax.jit, static_argnames=("num_valid_rows", "tile"))
def embedding_lookup(table, idx, *, num_valid_rows=None, tile=256):
    """Gather rows of `table` (V, D) at positions `idx` -> idx.shape + (D,).

    `table` may already be zero-padded along rows; `num_valid_rows` is the
    logical vocabulary size used for clamping (defaults to table.shape[0]).
    """
    V, D = table.shape
    if num_valid_rows is None:
        num_valid_rows = V

    # Lane-align the one-hot contraction dimension (no-op if pre-padded).
    Vp = _round_up(V, 128)
    if Vp != V:
        table = jnp.pad(table, ((0, Vp - V), (0, 0)))

    orig_shape = idx.shape
    flat_idx = idx.reshape(-1).astype(jnp.int32)
    N = flat_idx.shape[0]

    T = min(tile, _round_up(max(N, 1), 8))   # indices per grid step
    Np = _round_up(N, T)
    if Np != N:
        # Pad value 0 is a valid row; the padded outputs are sliced off below.
        flat_idx = jnp.pad(flat_idx, (0, Np - N))
    idx2d = flat_idx.reshape(Np, 1)
    n_tiles = Np // T

    itemsize = jnp.dtype(table.dtype).itemsize
    cost = pl.CostEstimate(
        flops=2 * Np * Vp * D,
        transcendentals=0,
        bytes_accessed=Vp * D * itemsize + Np * 4 + Np * D * itemsize,
    )

    kernel = functools.partial(_onehot_gather_kernel, num_valid=num_valid_rows)

    out = pl.pallas_call(
        kernel,
        out_shape=jax.ShapeDtypeStruct((Np, D), table.dtype),
        grid_spec=pltpu.PrefetchScalarGridSpec(
            num_scalar_prefetch=0,
            grid=(n_tiles,),
            in_specs=[
                pl.BlockSpec((T, 1), lambda i: (i, 0)),    # index tile
                pl.BlockSpec((Vp, D), lambda i: (0, 0)),   # resident table
            ],
            out_specs=pl.BlockSpec((T, D), lambda i: (i, 0)),
        ),
        compiler_params=pltpu.CompilerParams(
            dimension_semantics=("parallel",)),
        cost_estimate=cost,
    )(idx2d, table)

    if Np != N:
        out = out[:N]
    return out.reshape(orig_shape + (D,))


class Embedding:
    """JAX/Pallas port of the PyTorch Embedding module (2-D table, padding_idx=0)."""

    def __init__(self, size, padding_idx, std_init=0.01, key=None):
        assert len(size) == 2 and padding_idx == 0, (
            "This port implements the canonical 2-D table with padding_idx=0")
        if key is None:
            key = jax.random.PRNGKey(0)
        n, d = size
        self.padding_idx = padding_idx
        self.std_init = std_init
        self._n, self._d = n, d
        self._embedding = std_init * jax.random.normal(key, (n, d), jnp.float32)
        self.padding = jnp.zeros((1, d), jnp.float32)
        self._build_table()

    def _build_table(self):
        # Padded lookup table is built ONCE and cached (hoisted out of forward):
        #   rows [0, n): embedding, row n: zero padding row, rows [n+1, Vp): zero fill.
        V = jnp.concatenate([self._embedding, self.padding], axis=self.padding_idx)
        self._num_rows = self._n + 1
        Vp = _round_up(self._num_rows, 128)
        self._padded_table = jnp.pad(V, ((0, Vp - self._num_rows), (0, 0)))

    def initial(self, key=None):
        if key is None:
            key = jax.random.PRNGKey(0)
        self._embedding = self.std_init * jax.random.normal(
            key, (self._n, self._d), jnp.float32)
        self._build_table()

    def embedding(self):
        return self._embedding

    def forward(self, x):
        return embedding_lookup(
            self._padded_table, x, num_valid_rows=self._num_rows)


if __name__ == "__main__":
    key = jax.random.PRNGKey(0)
    k_emb, k_idx = jax.random.split(key)

    num_feature, dim = 16, 32
    emb = Embedding([num_feature, dim], padding_idx=0, std_init=0.01, key=k_emb)

    # indices in [0, num_feature]; value == num_feature hits the zero padding row
    x = jax.random.randint(k_idx, (2, 8), 0, num_feature + 1, dtype=jnp.int32)

    out = emb.forward(x)
    out = jax.block_until_ready(out)

    # reference (plain JAX advanced indexing == torch V[x])
    V = jnp.concatenate([emb._embedding, emb.padding], axis=0)
    ref = V[x]

    assert out.shape == (2, 8, dim), out.shape
    assert np.allclose(np.asarray(out), np.asarray(ref), atol=1e-6, rtol=1e-5), "mismatch"
    # padding index must yield exact zeros
    pad_mask = np.asarray(x) == num_feature
    assert np.all(np.asarray(out)[pad_mask] == 0.0)

    print("KERNEL_OK")
</pallas_src>

<mosaic_0001>
module attributes {stable_mosaic.version = 11 : i64} {
  func.func @_onehot_gather_kernel(%arg0: i32, %arg1: memref<16x1xi32, #tpu.memory_space<vmem>>, %arg2: memref<128x32xf32, #tpu.memory_space<vmem>>, %arg3: memref<16x32xf32, #tpu.memory_space<vmem>>) attributes {dimension_semantics = [#tpu.dimension_semantics<parallel>], iteration_bounds = array<i64: 1>, scalar_prefetch = 0 : i64, scratch_operands = 0 : i64, tpu.core_type = #tpu.core_type<tc>, window_params = [{transform_indices = @transform_0, window_bounds = array<i64: 16, 1>}, {pipeline_mode = #tpu.pipeline_mode<synchronous>, transform_indices = @transform_1, window_bounds = array<i64: 128, 32>}, {transform_indices = @transform_2, window_bounds = array<i64: 16, 32>}]} {
    %c0 = arith.constant 0 : index
    %c0_0 = arith.constant 0 : index
    %0 = vector.load %arg1[%c0, %c0_0] : memref<16x1xi32, #tpu.memory_space<vmem>>, vector<16x1xi32>
    %c0_i32 = arith.constant 0 : i32
    %c16_i32 = arith.constant 16 : i32
    %1 = vector.broadcast %c0_i32 : i32 to vector<16x1xi32>
    %2 = arith.maxsi %1, %0 : vector<16x1xi32>
    %3 = vector.broadcast %c16_i32 : i32 to vector<16x1xi32>
    %4 = arith.minsi %3, %2 : vector<16x1xi32>
    %5 = tpu.iota {dimensions = array<i32: 1>} : vector<16x128xi32>
    %6 = vector.broadcast %4 : vector<16x1xi32> to vector<16x128xi32>
    %7 = arith.cmpi eq, %5, %6 : vector<16x128xi32>
    %8 = arith.extui %7 : vector<16x128xi1> to vector<16x128xi32>
    %9 = arith.sitofp %8 : vector<16x128xi32> to vector<16x128xf32>
    %c0_1 = arith.constant 0 : index
    %c0_2 = arith.constant 0 : index
    %10 = vector.load %arg2[%c0_1, %c0_2] : memref<128x32xf32, #tpu.memory_space<vmem>>, vector<128x32xf32>
    %cst = arith.constant dense<0.000000e+00> : vector<16x32xf32>
    %11 = tpu.matmul %9, %10, %cst {dimension_numbers = #tpu.dot_dimension_numbers<[1], [0], [0], [1], [0, 0, 1, 1], [], []>} : vector<16x128xf32>, vector<128x32xf32>, vector<16x32xf32> -> vector<16x32xf32>
    %c0_3 = arith.constant 0 : index
    %c0_4 = arith.constant 0 : index
    %12 = vector.load %arg3[%c0_3, %c0_4] : memref<16x32xf32, #tpu.memory_space<vmem>>, vector<16x32xf32>
    tpu.vector_store %arg3[%c0_3, %c0_4], %11 {strides = array<i32>} : memref<16x32xf32, #tpu.memory_space<vmem>>, vector<16x32xf32>,
    return
  }
  func.func @transform_0(%arg0: i32) -> (i32, i32) {
    %c0_i32 = arith.constant 0 : i32
    %c0_i32_0 = arith.constant 0 : i32
    return %arg0, %c0_i32 : i32, i32
  }
  func.func @transform_1(%arg0: i32) -> (i32, i32) {
    %c0_i32 = arith.constant 0 : i32
    %c0_i32_0 = arith.constant 0 : i32
    %c0_i32_1 = arith.constant 0 : i32
    return %c0_i32, %c0_i32_0 : i32, i32
  }
  func.func @transform_2(%arg0: i32) -> (i32, i32) {
    %c0_i32 = arith.constant 0 : i32
    %c0_i32_0 = arith.constant 0 : i32
    return %arg0, %c0_i32 : i32, i32
  }
}

</mosaic_0001>

<bundles_post_ra>
// kernel: embedding_lookup.1
= control target key start
LH: loop header
LB: loop body
LE: loop exit
PB: predicated region body
PF: predicated region fallthrough
CT: control target
= control target key end

     0   :  { %v148_v3 = vmov 0   ;;  %s225_s0 = inlined_call_operand.vmem [shape: s32[16,1], index: 0, kind: input, shape index: {}]   ;;  %s226_s1 = inlined_call_operand.vmem [shape: f32[128,32], index: 1, kind: input, shape index: {}]   ;;  %s227_s2 = inlined_call_operand.hbm [shape: f32[16,32], index: 2, kind: output, shape index: {}]  }
   0x1   :  { %v12_v0 = vld [vmem:[%s225_s0] sm:$0xff]  ;;  %v13_v1 = vld [vmem:[%s225_s0 + $0x8] sm:$0xff]  ;;  %v51_v2 = vld [vmem:[%s226_s1 + $0x78] sm:$0xff]  ;;  %121 = vset.pattern.permute.xlu0 %v148_v3 }
   0x2   :  { %vm14_vm0 = vcmp.gt.s32.totalorder %v12_v0, 0  ;;  %vm16_vm1 = vcmp.gt.s32.totalorder %v13_v1, 0  ;;  %52 = vmatpush.msra.mxu0 %v51_v2  ;;  %v50_v4 = vld [vmem:[%s226_s1 + $0x70] sm:$0xff]  ;;  %v49_v6 = vld [vmem:[%s226_s1 + $0x68] sm:$0xff]  ;;  %100 = vmatpush.msra.mxu1 %v51_v2  ;;  %v48_v9 = vld [vmem:[%s226_s1 + $0x60] sm:$0xff] }
   0x3   :  { %v15_v5 = vsel %vm14_vm0, %v12_v0, 0  ;;  %v17_v8 = vsel %vm16_vm1, %v13_v1, 0 }
   0x4   :  { %vm18_vm2 = vcmp.lt.s32.totalorder %v15_v5, 16  ;;  %53 = vmatpush.msra.mxu0 %v50_v4  ;;  %101 = vmatpush.msra.mxu1 %v50_v4 }
   0x5   :  { %v19_v7 = vsel %vm18_vm2, %v15_v5, 16 }
   0x6   :  { %25 = vperm.xlu0 %121, %v19_v7   ;;  %54 = vmatpush.msra.mxu0 %v49_v6 }
   0x7   :  { %7 = vsyncpa [#allocation3], 0  ;;  %v47_v10 = vld [vmem:[%s226_s1 + $0x58] sm:$0xff]  ;;  %102 = vmatpush.msra.mxu1 %v49_v6  ;;  %vm20_vm3 = vcmp.lt.s32.totalorder %v17_v8, 16  ;;  %v46_v11 = vld [vmem:[%s226_s1 + $0x50] sm:$0xff]  ;;  %v22_v23 = vlaneseq  ;;  %v149_v26 = vmov 1.0  }
   0x8   :  { %55 = vmatpush.msra.mxu0 %v48_v9  ;;  %v21_v12 = vsel %vm20_vm3, %v17_v8, 16  ;;  %v45_v13 = vld [vmem:[%s226_s1 + $0x48] sm:$0xff]  ;;  %v44_v14 = vld [vmem:[%s226_s1 + $0x40] sm:$0xff]  ;;  %v43_v15 = vld [vmem:[%s226_s1 + $0x38] sm:$0xff]  ;;  %vm75_vm6 = vcmask 261120   ;;  %s150_s16 = smov [#allocation2]  }
   0x9   :  { %103 = vmatpush.msra.mxu1 %v48_v9  ;;  %v42_v16 = vld [vmem:[%s226_s1 + $0x30] sm:$0xff]  ;;  %v41_v17 = vld [vmem:[%s226_s1 + $0x28] sm:$0xff]  ;;  %v40_v18 = vld [vmem:[%s226_s1 + $0x20] sm:$0xff]  ;;  %v23_v24 = vand.u32 127, %v22_v23  ;;  %s82_s17 = sshll.u32 %s150_s16, 4  ;;  %s151_s19 = smov 128   ;;  %s83_s17 = int_to_ptr.vmem [resolvable:$true] %s82_s17 }
   0xa   :  { %56 = vmatpush.msra.mxu0 %v47_v10  ;;  %v39_v19 = vld [vmem:[%s226_s1 + $0x18] sm:$0xff]  ;;  %v38_v20 = vld [vmem:[%s226_s1 + $0x10] sm:$0xff]  ;;  %v37_v21 = vld [vmem:[%s226_s1 + $0x8] sm:$0xff]  ;;  %s152_s20 = smov 8  }
   0xb   :  { %104 = vmatpush.msra.mxu1 %v47_v10  ;;  %v36_v22 = vld [vmem:[%s226_s1] sm:$0xff]  ;;  %s84_s1 = sshll.u32 %s227_s2, 4  ;;  %s85_s1 = int_to_ptr.hbm [resolvable:$true] %s84_s1 }
   0xc   :  { %57 = vmatpush.msra.mxu0 %v46_v11 }
   0xd   :  { %105 = vmatpush.msra.mxu1 %v46_v11 }
   0xe   :  { %28 = vperm.xlu0 %121, %v21_v12   ;;  %58 = vmatpush.msra.mxu0 %v45_v13 }
   0xf   :  { %106 = vmatpush.msra.mxu1 %v45_v13 }
  0x10   :  { %59 = vmatpush.msra.mxu0 %v44_v14 }
  0x11   :  { %107 = vmatpush.msra.mxu1 %v44_v14 }
  0x12   :  { %60 = vmatpush.msra.mxu0 %v43_v15 }
  0x13   :  { %108 = vmatpush.msra.mxu1 %v43_v15 }
  0x14   :  { %61 = vmatpush.msra.mxu0 %v42_v16 }
  0x15   :  { %109 = vmatpush.msra.mxu1 %v42_v16 }
  0x16   :  { %62 = vmatpush.msra.mxu0 %v41_v17 }
  0x17   :  { %110 = vmatpush.msra.mxu1 %v41_v17 }
  0x18   :  { %63 = vmatpush.msra.mxu0 %v40_v18 }
  0x19   :  { %111 = vmatpush.msra.mxu1 %v40_v18 }
  0x1a   :  { %64 = vmatpush.msra.mxu0 %v39_v19 }
  0x1b   :  { %112 = vmatpush.msra.mxu1 %v39_v19 }
  0x1c   :  { %65 = vmatpush.msra.mxu0 %v38_v20 }
  0x1d   :  { %113 = vmatpush.msra.mxu1 %v38_v20 }
  0x1e   :  { %66 = vmatpush.msra.mxu0 %v37_v21 }
  0x1f   :  { %114 = vmatpush.msra.mxu1 %v37_v21 }
  0x20   :  { %67 = vmatpush.msra.mxu0 %v36_v22 }
  0x21   :  { %115 = vmatpush.msra.mxu1 %v36_v22 }
  0x78   :  { %v26_v25 = vpop.permute.xlu0 %25 }
  0x79   :  { %vm30_vm4 = vcmp.eq.s32.totalorder %v23_v24, %v26_v25 }
  0x7a   :  { %98 = vmatmul.msk.f32.vlgmr.msra.gmra.mxu0 %vm30_vm4, %v149_v26 }
  0x80   :  { %v29_v27 = vpop.permute.xlu0 %28 }
  0x81   :  { %vm31_vm5 = vcmp.eq.s32.totalorder %v23_v24, %v29_v27 }
  0x82   :  { %99 = vmatmul.msk.f32.vlgmr.msra.gmra.mxu1 %vm31_vm5, %v149_v26 }
  0xf7   :  { %v69_v28 = vpop.f32.mrf.mxu0 }
  0xf8   :  { %76 = vst.msk [vmem:[#allocation2] sm:$0xff] %vm75_vm6, %v69_v28 }
  0xff   :  { %v72_v29 = vpop.f32.mrf.mxu1 }
 0x100   :  { %77 = vst.msk [vmem:[#allocation2 + $0x8] sm:$0xff] %vm75_vm6, %v72_v29 }
 0x101   :  { %90 = dma.vmem_to_hbm [thread:$0]  %s83_s17, 256, %s85_s1, [#allocation3], %s151_s19, %s151_s19, %s152_s20  }
 0x102   :  { %146 = dma.done.wait [#allocation3], 256  }
 0x103   :  { %147 = vsyncadd [#allocation3], 4294967040 }
 0x104   :  { %95 = vsyncpa [#allocation3], 1 }

</bundles_post_ra>
